<compile_context>
chip_gen: v7x
topology: tpu7x:2x2x1
jax: 0.10.0
libtpu: 0.0.40
codegen_flags: <defaults>
</compile_context>

<pallas_src>
import functools

import jax
import jax.numpy as jnp
from jax.experimental import pallas as pl
from jax.experimental.pallas import tpu as pltpu


def _round_up(x, m):
    return (x + m - 1) // m * m


def _block_spec(block_shape, index_map, *, buffers=None):
    """BlockSpec with an optional explicit pipeline depth (graceful fallback
    if the installed jax does not support pipeline_mode / Buffered)."""
    if buffers is not None and hasattr(pl, "Buffered"):
        try:
            return pl.BlockSpec(block_shape, index_map,
                                pipeline_mode=pl.Buffered(buffers))
        except TypeError:
            pass
    return pl.BlockSpec(block_shape, index_map)


def _convbn_kernel(w_ref, b_ref, p_ref, o_ref):
    """o = w @ p + b for one (image, column-tile) of the im2col matmul.

    w_ref : (Cout, K)        bf16, BN-folded conv weight (resident)
    b_ref : (Cout, 1)        f32,  BN-folded bias        (resident)
    p_ref : (K, mi_block)    bf16, im2col columns for this tile
    o_ref : (Cout, mi_block) f32
    """
    acc = jnp.dot(w_ref[...], p_ref[...], preferred_element_type=jnp.float32)
    o_ref[...] = (acc + b_ref[...]).astype(o_ref.dtype)


_VMEM_TILE_BUDGET = 24 * 1024 * 1024  # per-step tile budget; fits v7x 64 MiB/TC


def _pick_mi_block(mi, k, cout):
    """Columns (OH*OW) per tile: full dim when it fits, else a 128-multiple."""
    per_col = 3 * k * 2 + 2 * cout * 4   # 3-deep bf16 patch bufs + 2x f32 out bufs
    if mi * per_col <= _VMEM_TILE_BUDGET:
        return mi, mi                    # single full-dim block, no padding
    blk = (_VMEM_TILE_BUDGET // per_col) // 128 * 128
    blk = int(max(128, min(blk, 8192)))
    return blk, _round_up(mi, blk)


@functools.partial(jax.jit, static_argnames=("stride", "padding", "eps"))
def conv_bn_forward(x_nchw, weight_oihw, gamma, beta, running_mean, running_var,
                    *, stride=(1, 1), padding=(0, 0), eps=1e-3):
    """Fused Conv2d(bias=False) + BatchNorm2d (eval mode). NCHW in, NCHW out."""
    N, Cin, H, W = x_nchw.shape
    Cout, _, KH, KW = weight_oihw.shape
    sh, sw = stride
    ph, pw = padding

    x = x_nchw.astype(jnp.float32)
    if ph or pw:
        x = jnp.pad(x, ((0, 0), (0, 0), (ph, ph), (pw, pw)))
    OH = (H + 2 * ph - KH) // sh + 1
    OW = (W + 2 * pw - KW) // sw + 1
    K = Cin * KH * KW
    Mi = OH * OW

    # ---- im2col built directly from NCHW: (N, K, Mi), K ordered (cin,kh,kw).
    # No layout transpose, no K padding; cast to bf16 for MXU rate + DMA bytes.
    taps = []
    for kh in range(KH):
        for kw in range(KW):
            taps.append(jax.lax.slice(
                x, (0, 0, kh, kw),
                (N, Cin, kh + (OH - 1) * sh + 1, kw + (OW - 1) * sw + 1),
                (1, 1, sh, sw)))                       # (N, Cin, OH, OW)
    patches = jnp.stack(taps, axis=2)                  # (N, Cin, KH*KW, OH, OW)
    patches = patches.reshape(N, K, Mi).astype(jnp.bfloat16)

    # ---- Fold eval-mode BN into the conv weight and a single bias vector.
    scale = gamma.astype(jnp.float32) * jax.lax.rsqrt(
        running_var.astype(jnp.float32) + eps)                       # (Cout,)
    shift = beta.astype(jnp.float32) - running_mean.astype(jnp.float32) * scale
    w_mat = weight_oihw.astype(jnp.float32).reshape(Cout, K) * scale[:, None]
    w_mat = w_mat.astype(jnp.bfloat16)                               # (Cout, K)
    bias = shift.reshape(Cout, 1)                                    # f32

    # ---- Tiling: lane dim is the OH*OW column axis (large & dense).
    mi_block, mi_pad = _pick_mi_block(Mi, K, Cout)
    if mi_pad != Mi:
        patches = jnp.pad(patches, ((0, 0), (0, 0), (0, mi_pad - Mi)))
    grid = (N, mi_pad // mi_block)
    patch_buffers = 3 if grid[1] > 2 else None   # deeper pipeline only when useful

    # VMEM budget (assume residents still double-buffer if Buffered(1) is ignored).
    tile_bytes = ((3 if patch_buffers else 2) * K * mi_block * 2
                  + 2 * Cout * mi_block * 4)
    resident_bytes = 2 * (Cout * K * 2 + Cout * 4)
    vmem_limit = int(min(40 * 1024 * 1024,
                         max(4 * 1024 * 1024, 2 * (tile_bytes + resident_bytes))))

    # Advisory cost from true (unpadded) dims and actual bytes moved.
    cost = pl.CostEstimate(
        flops=2 * N * Mi * K * Cout,
        transcendentals=0,
        bytes_accessed=(N * Mi * K * 2 + Cout * K * 2 + Cout * 4
                        + N * Mi * Cout * 4))

    out = pl.pallas_call(
        _convbn_kernel,
        out_shape=jax.ShapeDtypeStruct((N, Cout, mi_pad), jnp.float32),
        grid=grid,
        in_specs=[
            _block_spec((Cout, K), lambda n, m: (0, 0), buffers=1),   # weight
            _block_spec((Cout, 1), lambda n, m: (0, 0), buffers=1),   # bias
            _block_spec((None, K, mi_block), lambda n, m: (n, 0, m),
                        buffers=patch_buffers),                       # patches
        ],
        out_specs=pl.BlockSpec((None, Cout, mi_block), lambda n, m: (n, 0, m)),
        compiler_params=pltpu.CompilerParams(
            dimension_semantics=("parallel", "parallel"),
            vmem_limit_bytes=vmem_limit),
        cost_estimate=cost,
    )(w_mat, bias, patches)

    if mi_pad != Mi:
        out = out[:, :, :Mi]
    return out.reshape(N, Cout, OH, OW)   # already NCHW; reshape is metadata-only


if __name__ == "__main__":
    # ConvBN(in_channels=3, out_channels=32, kernel_size=3)  (stride=1, pad=0)
    N, Cin, H, W = 2, 3, 16, 16
    Cout, KH, KW = 32, 3, 3
    stride = (1, 1)
    eps = 1e-3

    key = jax.random.PRNGKey(0)
    k_x, k_w, k_g, k_b, k_m, k_v = jax.random.split(key, 6)

    x = jax.random.normal(k_x, (N, Cin, H, W), dtype=jnp.float32)
    conv_weight = 0.1 * jax.random.normal(k_w, (Cout, Cin, KH, KW), dtype=jnp.float32)
    bn_gamma = 1.0 + 0.1 * jax.random.normal(k_g, (Cout,), dtype=jnp.float32)
    bn_beta = 0.1 * jax.random.normal(k_b, (Cout,), dtype=jnp.float32)
    bn_mean = 0.05 * jax.random.normal(k_m, (Cout,), dtype=jnp.float32)
    bn_var = 0.5 + jnp.abs(jax.random.normal(k_v, (Cout,), dtype=jnp.float32))

    out = conv_bn_forward(x, conv_weight, bn_gamma, bn_beta, bn_mean, bn_var,
                          stride=stride, eps=eps)
    out = jax.block_until_ready(out)

    # Pure-JAX f32 reference (conv + eval-mode BN).
    ref_conv = jax.lax.conv_general_dilated(
        x, conv_weight, window_strides=stride, padding="VALID",
        dimension_numbers=("NCHW", "OIHW", "NCHW"))
    ref = ((ref_conv - bn_mean[None, :, None, None])
           / jnp.sqrt(bn_var[None, :, None, None] + eps)
           * bn_gamma[None, :, None, None]
           + bn_beta[None, :, None, None])

    OH = (H - KH) // stride[0] + 1
    OW = (W - KW) // stride[1] + 1
    assert out.shape == (N, Cout, OH, OW), out.shape
    # bf16 operands (f32 accumulation) -> relaxed tolerance vs the f32 reference.
    max_err = float(jnp.max(jnp.abs(out - ref)))
    assert jnp.allclose(out, ref, atol=3e-2, rtol=3e-2), (
        f"mismatch vs reference; max abs err = {max_err}")

    print("KERNEL_OK")
</pallas_src>

<mosaic_0001>
module attributes {stable_mosaic.version = 11 : i64} {
  func.func @_convbn_kernel(%arg0: i32, %arg1: i32, %arg2: memref<32x27xbf16, #tpu.memory_space<vmem>>, %arg3: memref<32x1xf32, #tpu.memory_space<vmem>>, %arg4: memref<1x27x196xbf16, #tpu.memory_space<vmem>>, %arg5: memref<1x32x196xf32, #tpu.memory_space<vmem>>) attributes {dimension_semantics = [#tpu.dimension_semantics<parallel>, #tpu.dimension_semantics<parallel>], iteration_bounds = array<i64: 2, 1>, scalar_prefetch = 0 : i64, scratch_operands = 0 : i64, tpu.core_type = #tpu.core_type<tc>, window_params = [{pipeline_mode = #tpu.pipeline_mode<synchronous>, transform_indices = @transform_0, window_bounds = array<i64: 32, 27>}, {pipeline_mode = #tpu.pipeline_mode<synchronous>, transform_indices = @transform_1, window_bounds = array<i64: 32, 1>}, {transform_indices = @transform_2, window_bounds = array<i64: 1, 27, 196>}, {transform_indices = @transform_3, window_bounds = array<i64: 1, 32, 196>}]} {
    %c0 = arith.constant 0 : index
    %c0_0 = arith.constant 0 : index
    %0 = vector.load %arg2[%c0, %c0_0] : memref<32x27xbf16, #tpu.memory_space<vmem>>, vector<32x27xbf16>
    %c0_1 = arith.constant 0 : index
    %c0_2 = arith.constant 0 : index
    %c0_3 = arith.constant 0 : index
    %1 = vector.load %arg4[%c0_1, %c0_2, %c0_3] : memref<1x27x196xbf16, #tpu.memory_space<vmem>>, vector<1x27x196xbf16>
    %2 = vector.shape_cast %1 : vector<1x27x196xbf16> to vector<27x196xbf16>
    %cst = arith.constant dense<0.000000e+00> : vector<32x196xf32>
    %3 = tpu.matmul %0, %2, %cst {dimension_numbers = #tpu.dot_dimension_numbers<[1], [0], [0], [1], [0, 0, 1, 1], [], []>} : vector<32x27xbf16>, vector<27x196xbf16>, vector<32x196xf32> -> vector<32x196xf32>
    %c0_4 = arith.constant 0 : index
    %c0_5 = arith.constant 0 : index
    %4 = vector.load %arg3[%c0_4, %c0_5] : memref<32x1xf32, #tpu.memory_space<vmem>>, vector<32x1xf32>
    %5 = vector.broadcast %4 : vector<32x1xf32> to vector<32x196xf32>
    %6 = arith.addf %3, %5 : vector<32x196xf32>
    %c0_6 = arith.constant 0 : index
    %c0_7 = arith.constant 0 : index
    %c0_8 = arith.constant 0 : index
    %7 = vector.load %arg5[%c0_6, %c0_7, %c0_8] : memref<1x32x196xf32, #tpu.memory_space<vmem>>, vector<1x32x196xf32>
    %8 = vector.shape_cast %7 : vector<1x32x196xf32> to vector<32x196xf32>
    %9 = vector.shape_cast %6 : vector<32x196xf32> to vector<1x32x196xf32>
    tpu.vector_store %arg5[%c0_6, %c0_7, %c0_8], %9 {strides = array<i32>} : memref<1x32x196xf32, #tpu.memory_space<vmem>>, vector<1x32x196xf32>,
    return
  }
  func.func @transform_0(%arg0: i32, %arg1: i32) -> (i32, i32) {
    %c0_i32 = arith.constant 0 : i32
    %c0_i32_0 = arith.constant 0 : i32
    %c0_i32_1 = arith.constant 0 : i32
    return %c0_i32, %c0_i32_0 : i32, i32
  }
  func.func @transform_1(%arg0: i32, %arg1: i32) -> (i32, i32) {
    %c0_i32 = arith.constant 0 : i32
    %c0_i32_0 = arith.constant 0 : i32
    %c0_i32_1 = arith.constant 0 : i32
    return %c0_i32, %c0_i32_0 : i32, i32
  }
  func.func @transform_2(%arg0: i32, %arg1: i32) -> (i32, i32, i32) {
    %c0_i32 = arith.constant 0 : i32
    %c0_i32_0 = arith.constant 0 : i32
    return %arg0, %c0_i32, %arg1 : i32, i32, i32
  }
  func.func @transform_3(%arg0: i32, %arg1: i32) -> (i32, i32, i32) {
    %c0_i32 = arith.constant 0 : i32
    %c0_i32_0 = arith.constant 0 : i32
    return %arg0, %c0_i32, %arg1 : i32, i32, i32
  }
}

</mosaic_0001>

<bundles_post_ra>
// kernel: conv_bn_forward.1
= control target key start
LH: loop header
LB: loop body
LE: loop exit
PB: predicated region body
PF: predicated region fallthrough
CT: control target
= control target key end

     0   :  { %s544_s12 = smov 0   ;;  %s546_s13 = smov 0   ;;  %s603_s0 = inlined_call_operand.vmem [shape: bf16[32,27], index: 0, kind: input, shape index: {}]   ;;  %s604_s1 = inlined_call_operand.vmem [shape: f32[32,1], index: 1, kind: input, shape index: {}]   ;;  %s605_s2 = inlined_call_operand.vmem [shape: bf16[2,27,196], index: 2, kind: input, shape index: {}]   ;;  %s606_s3 = inlined_call_operand.vmem [shape: f32[2,32,196], index: 3, kind: output, shape index: {}]  }
   0x1   :  { %s548_s14 = smov 0  }
   0x2 LB: > { %s25_s15 = sadd.s32 1, %s516_s13  ;;  %p441_p0 = scmp.ge.s32.totalorder %s520_s14, 1  ;;  %s520_s14 = sphi %s548_s14, %s13_s14   ;;  %s516_s13 = sphi %s546_s13, %s608_s13   ;;  %s512_s12 = sphi %s544_s12, %s607_s12  }
   0x3   : > { %p27_p1 = scmp.ge.s32.totalorder %s25_s15, 2  ;;  %p158_p2 = scmp.lt.s32.totalorder %s520_s14, 3 }
   0x5   : > { %s610_s15 = smov (%p27_p1, %s25_s15), 0  ;;  %p159_p3 = pnand %p441_p0, %p158_p2 }
   0x6   : > { %p191_p4 = scmp.lt.s32.totalorder (!%p159_p3), %s512_s12, 1  ;;  %vm278_vm0 = vcmask (!%p159_p3), 1044480   ;;  %v522_v0 = vmov (!%p159_p3), 0   ;;  %v221_v1 = vld [vmem:[%s604_s1 + $0x10] sm:$0xff] (!%p159_p3)  ;;  %v219_v2 = vld [vmem:[%s604_s1] sm:$0xff] (!%p159_p3)  ;;  %vm279_vm1 = vcmask (!%p159_p3), 1045504  }
   0x7   : > { %162 = sbr.rel (%p159_p3) target bundleno = 244 (0xf4), region = 32  ;;  %320 = vmatprep.mubr.bf16.mxu0 (!%p159_p3), %v522_v0  ;;  %330 = vmatprep.mubr.bf16.mxu1 (!%p159_p3), %v522_v0  ;;  %v523_v3 = vmov (!%p159_p3), 65535   ;;  %v222_v5 = vld [vmem:[%s604_s1 + $0x18] sm:$0xff] (!%p159_p3)  ;;  %v220_v6 = vld [vmem:[%s604_s1 + $0x8] sm:$0xff] (!%p159_p3)  ;;  %v496_v14 = vld [vmem:[%s603_s0] sm:$0xff] (!%p159_p3)   ;;  %vm271_vm2 = vcmask (!%p159_p3), 220160  }
   0x8   : > { %489 = vset.pattern.permute.xlu1 (!%p159_p3), %v522_v0  ;;  %488 = vset.pattern.permute.xlu0 (!%p159_p3), %v522_v0  ;;  %v280_v4 = vsel (!%p159_p3), %vm278_vm0, 4294967295, %v523_v3  ;;  %v497_v15 = vld [vmem:[%s603_s0 + $0x8] sm:$0xff] (!%p159_p3)   ;;  %vm342_vm3 = vcmask (!%p159_p3), 556032  }
   0x9   : > { %235 = vperm.xlu1 (!%p159_p3), %489, %v221_v1   ;;  %225 = vperm.xlu0 (!%p159_p3), %488, %v219_v2   ;;  %v281_v9 = vsel (!%p159_p3), %vm279_vm1, %v280_v4, 0 }
   0xd   : > { %240 = vperm.xlu1 (!%p159_p3), %489, %v222_v5   ;;  %230 = vperm.xlu0 (!%p159_p3), %488, %v220_v6  }
   0xe   : > { %s612_s12 = smov (!%p191_p4, %s512_s12), 1 }
   0xf   : > { %s456_s20 = sshll.u32 %s612_s12, 5  ;;  %s457_s5 = sshll.u32 %s612_s12, 6 }
  0x10   : > { %s198_s23 = scalar_lea.vmem %s605_s2, %s456_s20  ;;  %s208_s8 = scalar_lea.vmem %s606_s3, %s457_s5 }
  0x11   : > { %v490_v7 = vld [vmem:[%s198_s23 + $0x4] ss:$8 sps:$4 sm:$0xff]   ;;  %v492_v8 = vld [vmem:[%s198_s23] ss:$8 sps:$4 sm:$0xff]  }
  0x12   : > { %288 = vmatprep.subr.bf16.mxu0 %v490_v7  ;;  %458 = vmatprep.subr.bf16.mxu1 %v490_v7  ;;  %v493_v10 = vld [vmem:[%s198_s23 + $0x14] ss:$8 sps:$4 sm:$0x3f]   ;;  %v495_v11 = vld [vmem:[%s198_s23 + $0x10] ss:$8 sps:$4 sm:$0x3f]  }
  0x13   : > { %289 = vmatpush1.bf16.msra.mxu0 %v492_v8  ;;  %460 = vmatpush1.bf16.msra.mxu1 %v492_v8  ;;  %v286_v12 = vand.u32 %v493_v10, %v281_v9  ;;  %v283_v13 = vand.u32 %v495_v11, %v281_v9 }
  0x15   : > { %290 = vmatprep.subr.bf16.mxu0 %v286_v12  ;;  %459 = vmatprep.subr.bf16.mxu1 %v286_v12 }
  0x17   : > { %291 = vmatpush1.bf16.msra.mxu0 %v283_v13  ;;  %461 = vmatpush1.bf16.msra.mxu1 %v283_v13 }
  0x1a   : > { %452 = vmatmul.mubr.msk.bf16.vlgmr.msra.gmra.mrb[0].mxu0 %vm271_vm2, %v496_v14  ;;  %453 = vmatmul.mubr.msk.bf16.vlgmr.msra.gmra.mrb[0].mxu1 %vm271_vm2, %v497_v15 }
  0x88   : > { %v236_v16 = vpop.permute.xlu1 %235  ;;  %v226_v17 = vpop.permute.xlu0 %225 }
  0x8c   : > { %v241_v18 = vpop.permute.xlu1 %240  ;;  %v231_v19 = vpop.permute.xlu0 %230 }
  0xed   : > { %v322_v20 = vpop.f32.mrb[0].mxu0  ;;  %v332_v21 = vpop.f32.mrb[0].mxu1 }
  0xee   : > { %v323_v22 = vadd.f32 %v322_v20, %v226_v17  ;;  %v333_v23 = vadd.f32 %v332_v21, %v236_v16  ;;  %v324_v24 = vpop.f32.mrb[1].mxu0  ;;  %v334_v25 = vpop.f32.mrb[1].mxu1 }
  0xef   : > { %v325_v26 = vadd.f32 %v324_v24, %v226_v17  ;;  %v335_v27 = vadd.f32 %v334_v25, %v236_v16  ;;  %v326_v28 = vpop.f32.mrb[2].mxu0  ;;  %v336_v29 = vpop.f32.mrb[2].mxu1 }
  0xf0   : > { %341 = vst [vmem:[%s208_s8] sm:$0xff] %v323_v22  ;;  %346 = vst [vmem:[%s208_s8 + $0x20] sm:$0xff] %v333_v23  ;;  %v327_v30 = vadd.f32 %v326_v28, %v231_v19  ;;  %v337_v31 = vadd.f32 %v336_v29, %v241_v18  ;;  %v328_v32 = vpop.f32.mrb[3].mxu0  ;;  %v338_v33 = vpop.f32.mrb[3].mxu1 }
  0xf1   : > { %343 = vst.msk [vmem:[%s208_s8 + $0x8] sm:$0xff] %vm342_vm3, %v325_v26  ;;  %347 = vst.msk [vmem:[%s208_s8 + $0x28] sm:$0xff] %vm342_vm3, %v335_v27  ;;  %v329_v34 = vadd.f32 %v328_v32, %v231_v19  ;;  %v339_v35 = vadd.f32 %v338_v33, %v241_v18 }
  0xf2   : > { %344 = vst [vmem:[%s208_s8 + $0x10] sm:$0xff] %v327_v30  ;;  %348 = vst [vmem:[%s208_s8 + $0x30] sm:$0xff] %v337_v31 }
  0xf3   : > { %345 = vst.msk [vmem:[%s208_s8 + $0x18] sm:$0xff] %vm342_vm3, %v329_v34  ;;  %349 = vst.msk [vmem:[%s208_s8 + $0x38] sm:$0xff] %vm342_vm3, %v339_v35 }
  0xf4 PF: > { %s13_s14 = sadd.s32 1, %s520_s14   ;;  %s607_s12 = smov %s516_s13 }
  0xf5   : > { %p10_p5 = scmp.ge.s32.totalorder %s13_s14, 4   ;;  %s608_s13 = smov %s610_s15 }
  0xf7   :  { %12 = sbr.rel (!%p10_p5) target bundleno = 2 (0x2), region = 62 }

</bundles_post_ra>
